<compile_context>
chip_gen: v5e
topology: v5e:2x2
jax: 0.10.0
libtpu: 0.0.40
codegen_flags: <defaults>
</compile_context>

<pallas_src>
import jax
import jax.numpy as jnp
from jax.experimental import pallas as pl
from jax.experimental.pallas import tpu as pltpu

_LANE = 128      # vreg lane width
_SUBLANE = 8     # f32 sublane width


def _round_up(x, m):
    return (x + m - 1) // m * m


def _actor_critic_kernel(xt_ref, w1t_ref, b1c_ref, wht_ref, out_ref):
    # fc1 + relu in transposed orientation: [h_pad, k] @ [k, tb] + [h_pad, 1].
    h = jnp.maximum(
        jnp.dot(w1t_ref[...], xt_ref[...], preferred_element_type=jnp.float32)
        + b1c_ref[...], 0.0)
    # Fused policy|value head (biases folded via the constant-1 hidden row):
    # one MXU push, one lane-dense (tb-wide) store of an 8-sublane slab.
    out_ref[...] = jnp.dot(wht_ref[...], h,
                           preferred_element_type=jnp.float32).astype(out_ref.dtype)


def pack_params(params):
    """Pack PyTorch-style linear params into the transposed, padded fused weights."""
    w1, b1 = params["w1"], params["b1"].reshape(-1)
    wpi, bpi = params["wpi"], params["bpi"].reshape(-1)
    wv, bv = params["wv"], params["bv"].reshape(-1)
    input_dim, fc1_dims = w1.shape
    n_actions = wpi.shape[1]

    h_pad = _round_up(fc1_dims + 1, _LANE)       # +1 constant-1 row carries head bias
    o_sub = _round_up(n_actions + 1, _SUBLANE)   # [pi rows | v row], sublane padded

    w1t = jnp.zeros((h_pad, input_dim), jnp.float32)
    w1t = w1t.at[:fc1_dims, :].set(w1.T.astype(jnp.float32))

    b1c = jnp.zeros((h_pad, 1), jnp.float32)
    b1c = b1c.at[:fc1_dims, 0].set(b1.astype(jnp.float32))
    b1c = b1c.at[fc1_dims, 0].set(1.0)           # relu(0 + 1) = 1 -> head-bias lane

    wht = jnp.zeros((o_sub, h_pad), jnp.float32)
    wht = wht.at[:n_actions, :fc1_dims].set(wpi.T.astype(jnp.float32))
    wht = wht.at[n_actions, :fc1_dims].set(wv[:, 0].astype(jnp.float32))
    wht = wht.at[:n_actions, fc1_dims].set(bpi.astype(jnp.float32))
    wht = wht.at[n_actions, fc1_dims].set(bv[0].astype(jnp.float32))

    return {"w1t": w1t, "b1c": b1c, "wht": wht,
            "input_dim": input_dim, "n_actions": n_actions}


def actor_critic_forward(state, packed, *, block_b=4096):
    """Fused fc1 -> relu -> [pi | v] forward. Returns (pi [B, n_actions], v [B, 1])."""
    input_dim = packed["input_dim"]
    n_actions = packed["n_actions"]
    w1t, b1c, wht = packed["w1t"], packed["b1c"], packed["wht"]
    h_pad = w1t.shape[0]
    o_sub = wht.shape[0]

    B = state.shape[0]

    # Batch tile lives on the lane axis: multiple of 128 (or the full extent
    # for tiny batches); capped at ceil(B/2) rounded to 128 so the grid has
    # >= 2 steps whenever the batch is big enough — keeps both v7x TCs busy.
    if B <= _LANE:
        tb = B
    else:
        blk = max(_LANE, _round_up(block_b, _LANE))
        half = _round_up(pl.cdiv(B, 2), _LANE)
        tb = min(blk, half)
    b_pad = _round_up(B, tb)

    # Layout plumbing only: tiny transpose (16 B/row) vs 480 B/row saved on
    # the output side; lane-pad the batch only when it is not a tile multiple.
    xt = state.T.astype(jnp.float32)                       # [input_dim, B]
    if b_pad != B:
        xt = jnp.zeros((input_dim, b_pad), jnp.float32).at[:, :B].set(xt)

    grid = (b_pad // tb,)

    # True byte need: double-buffered x/out tiles + hidden intermediate +
    # resident weights; 2x headroom. Tiny vs even v7x's 64 MiB VMEM.
    vmem_bytes = 4 * (2 * input_dim * tb + 2 * o_sub * tb + h_pad * tb
                      + h_pad * (input_dim + 1) + o_sub * h_pad)
    vmem_limit = int(min(max(2 * vmem_bytes, 4 << 20), 64 << 20))

    out_t = pl.pallas_call(
        _actor_critic_kernel,
        out_shape=jax.ShapeDtypeStruct((o_sub, b_pad), jnp.float32),
        grid=grid,
        in_specs=[
            pl.BlockSpec((input_dim, tb), lambda i: (0, i)),     # batch-tiled input
            pl.BlockSpec((h_pad, input_dim), lambda i: (0, 0)),  # resident W1^T
            pl.BlockSpec((h_pad, 1), lambda i: (0, 0)),          # resident fc1 bias (+1 row)
            pl.BlockSpec((o_sub, h_pad), lambda i: (0, 0)),      # resident fused head^T
        ],
        out_specs=pl.BlockSpec((o_sub, tb), lambda i: (0, i)),
        compiler_params=pltpu.CompilerParams(
            dimension_semantics=("parallel",),   # megacore batch split on v7x
            vmem_limit_bytes=vmem_limit),
    )(xt, w1t, b1c, wht)

    pi = out_t[:n_actions, :B].T
    v = out_t[n_actions:n_actions + 1, :B].T
    return pi, v


def init_params(key, input_dim, n_actions, fc1_dims=64):
    """Deterministic PyTorch-style (uniform +/- 1/sqrt(fan_in)) initialization."""
    ks = jax.random.split(key, 6)

    def lin(kw, kb, fan_in, fan_out):
        bound = 1.0 / jnp.sqrt(jnp.float32(fan_in))
        w = jax.random.uniform(kw, (fan_in, fan_out), jnp.float32, -bound, bound)
        b = jax.random.uniform(kb, (1, fan_out), jnp.float32, -bound, bound)
        return w, b

    w1, b1 = lin(ks[0], ks[1], input_dim, fc1_dims)
    wpi, bpi = lin(ks[2], ks[3], fc1_dims, n_actions)
    wv, bv = lin(ks[4], ks[5], fc1_dims, 1)
    # TODO(synk): fc2 (fc1_dims -> fc2_dims) is declared in __init__ but unused
    # in forward(); it is intentionally omitted here.
    return {"w1": w1, "b1": b1, "wpi": wpi, "bpi": bpi, "wv": wv, "bv": bv}


def _reference(state, params):
    h = jnp.maximum(state @ params["w1"] + params["b1"], 0.0)
    return h @ params["wpi"] + params["bpi"], h @ params["wv"] + params["bv"]


if __name__ == "__main__":
    key = jax.random.PRNGKey(0)
    k_param, k_state1, k_state2 = jax.random.split(key, 3)

    input_dim = 4    # e.g. CartPole observation dim -> input_dims=(4,)
    n_actions = 2
    fc1_dims = 64

    params = init_params(k_param, input_dim, n_actions, fc1_dims)
    packed = pack_params(params)

    # Case 1: small actor-step batch (single grid step, full-extent lane tile).
    B1 = 8
    state1 = jax.random.normal(k_state1, (B1, input_dim), dtype=jnp.float32)
    pi1, v1 = actor_critic_forward(state1, packed)
    jax.block_until_ready((pi1, v1))
    pi1_ref, v1_ref = _reference(state1, params)
    assert pi1.shape == (B1, n_actions) and v1.shape == (B1, 1)
    assert jnp.allclose(pi1, pi1_ref, atol=1e-5, rtol=1e-5)
    assert jnp.allclose(v1, v1_ref, atol=1e-5, rtol=1e-5)

    # Case 2: exercise the multi-step grid + lane-padding path
    # (B not a tile multiple, grid > 1, 128-wide lane tiles).
    B2 = 300
    state2 = jax.random.normal(k_state2, (B2, input_dim), dtype=jnp.float32)
    pi2, v2 = actor_critic_forward(state2, packed, block_b=128)
    jax.block_until_ready((pi2, v2))
    pi2_ref, v2_ref = _reference(state2, params)
    assert pi2.shape == (B2, n_actions) and v2.shape == (B2, 1)
    assert jnp.allclose(pi2, pi2_ref, atol=1e-5, rtol=1e-5)
    assert jnp.allclose(v2, v2_ref, atol=1e-5, rtol=1e-5)

    print("KERNEL_OK")
</pallas_src>

<mosaic_0001>
module attributes {stable_mosaic.version = 11 : i64} {
  func.func @_actor_critic_kernel(%arg0: i32, %arg1: memref<4x8xf32, #tpu.memory_space<vmem>>, %arg2: memref<128x4xf32, #tpu.memory_space<vmem>>, %arg3: memref<128x1xf32, #tpu.memory_space<vmem>>, %arg4: memref<8x128xf32, #tpu.memory_space<vmem>>, %arg5: memref<8x8xf32, #tpu.memory_space<vmem>>) attributes {dimension_semantics = [#tpu.dimension_semantics<parallel>], iteration_bounds = array<i64: 1>, scalar_prefetch = 0 : i64, scratch_operands = 0 : i64, tpu.core_type = #tpu.core_type<tc>, window_params = [{transform_indices = @transform_0, window_bounds = array<i64: 4, 8>}, {pipeline_mode = #tpu.pipeline_mode<synchronous>, transform_indices = @transform_1, window_bounds = array<i64: 128, 4>}, {pipeline_mode = #tpu.pipeline_mode<synchronous>, transform_indices = @transform_2, window_bounds = array<i64: 128, 1>}, {pipeline_mode = #tpu.pipeline_mode<synchronous>, transform_indices = @transform_3, window_bounds = array<i64: 8, 128>}, {transform_indices = @transform_4, window_bounds = array<i64: 8, 8>}]} {
    %c0 = arith.constant 0 : index
    %c0_0 = arith.constant 0 : index
    %0 = vector.load %arg2[%c0, %c0_0] : memref<128x4xf32, #tpu.memory_space<vmem>>, vector<128x4xf32>
    %c0_1 = arith.constant 0 : index
    %c0_2 = arith.constant 0 : index
    %1 = vector.load %arg1[%c0_1, %c0_2] : memref<4x8xf32, #tpu.memory_space<vmem>>, vector<4x8xf32>
    %cst = arith.constant dense<0.000000e+00> : vector<128x8xf32>
    %2 = tpu.matmul %0, %1, %cst {dimension_numbers = #tpu.dot_dimension_numbers<[1], [0], [0], [1], [0, 0, 1, 1], [], []>} : vector<128x4xf32>, vector<4x8xf32>, vector<128x8xf32> -> vector<128x8xf32>
    %c0_3 = arith.constant 0 : index
    %c0_4 = arith.constant 0 : index
    %3 = vector.load %arg3[%c0_3, %c0_4] : memref<128x1xf32, #tpu.memory_space<vmem>>, vector<128x1xf32>
    %4 = vector.broadcast %3 : vector<128x1xf32> to vector<128x8xf32>
    %5 = arith.addf %2, %4 : vector<128x8xf32>
    %cst_5 = arith.constant 0.000000e+00 : f32
    %6 = vector.broadcast %cst_5 : f32 to vector<128x8xf32>
    %7 = arith.maximumf %5, %6 : vector<128x8xf32>
    %c0_6 = arith.constant 0 : index
    %c0_7 = arith.constant 0 : index
    %8 = vector.load %arg4[%c0_6, %c0_7] : memref<8x128xf32, #tpu.memory_space<vmem>>, vector<8x128xf32>
    %cst_8 = arith.constant dense<0.000000e+00> : vector<8x8xf32>
    %9 = tpu.matmul %8, %7, %cst_8 {dimension_numbers = #tpu.dot_dimension_numbers<[1], [0], [0], [1], [0, 0, 1, 1], [], []>} : vector<8x128xf32>, vector<128x8xf32>, vector<8x8xf32> -> vector<8x8xf32>
    %c0_9 = arith.constant 0 : index
    %c0_10 = arith.constant 0 : index
    %10 = vector.load %arg5[%c0_9, %c0_10] : memref<8x8xf32, #tpu.memory_space<vmem>>, vector<8x8xf32>
    tpu.vector_store %arg5[%c0_9, %c0_10], %9 {strides = array<i32>} : memref<8x8xf32, #tpu.memory_space<vmem>>, vector<8x8xf32>,
    return
  }
  func.func @transform_0(%arg0: i32) -> (i32, i32) {
    %c0_i32 = arith.constant 0 : i32
    %c0_i32_0 = arith.constant 0 : i32
    return %c0_i32, %arg0 : i32, i32
  }
  func.func @transform_1(%arg0: i32) -> (i32, i32) {
    %c0_i32 = arith.constant 0 : i32
    %c0_i32_0 = arith.constant 0 : i32
    %c0_i32_1 = arith.constant 0 : i32
    return %c0_i32, %c0_i32_0 : i32, i32
  }
  func.func @transform_2(%arg0: i32) -> (i32, i32) {
    %c0_i32 = arith.constant 0 : i32
    %c0_i32_0 = arith.constant 0 : i32
    %c0_i32_1 = arith.constant 0 : i32
    return %c0_i32, %c0_i32_0 : i32, i32
  }
  func.func @transform_3(%arg0: i32) -> (i32, i32) {
    %c0_i32 = arith.constant 0 : i32
    %c0_i32_0 = arith.constant 0 : i32
    %c0_i32_1 = arith.constant 0 : i32
    return %c0_i32, %c0_i32_0 : i32, i32
  }
  func.func @transform_4(%arg0: i32) -> (i32, i32) {
    %c0_i32 = arith.constant 0 : i32
    %c0_i32_0 = arith.constant 0 : i32
    return %c0_i32, %arg0 : i32, i32
  }
}

</mosaic_0001>

<bundles_post_ra>
// kernel: tpu_custom_call.1
= control target key start
LH: loop header
LB: loop body
LE: loop exit
PB: predicated region body
PF: predicated region fallthrough
CT: control target
= control target key end

     0   :  { %vm180_vm0 = vcmask 1043456   ;;  %v354_v3 = vmov 0   ;;  %vm131_vm1 = vcmask 31744   ;;  %s508_s0 = inlined_call_operand.vmem [shape: f32[4,8], index: 0, kind: input, shape index: {}]   ;;  %s509_s1 = inlined_call_operand.vmem [shape: f32[128,4], index: 1, kind: input, shape index: {}]   ;;  %s510_s2 = inlined_call_operand.vmem [shape: f32[128,1], index: 2, kind: input, shape index: {}]   ;;  %s511_s3 = inlined_call_operand.vmem [shape: f32[8,128], index: 3, kind: input, shape index: {}]   ;;  %s512_s4 = inlined_call_operand.hbm [shape: f32[8,8], index: 4, kind: output, shape index: {}]  }
   0x1   :  { %v34_v0 = vld [vmem:[%s508_s0] sm:$0xf]  ;;  %v50_v1 = vld [vmem:[%s510_s2 + $0x78] sm:$0xff]  ;;  %325 = vset.pattern.permute.xlu0 %v354_v3  ;;  %v24_v4 = vld [vmem:[%s509_s1 + $0x30] sm:$0xff]  ;;  %326 = vset.pattern.permute.xlu1 %v354_v3 }
   0x2   :  { %v18_v2 = vld [vmem:[%s509_s1] sm:$0xff]  ;;  %304 = vmatpush.msk.msra.mxu0 %vm180_vm0, %v34_v0  ;;  %321 = vmatpush.msk.msra.mxu2 %vm180_vm0, %v34_v0  ;;  %v48_v6 = vld [vmem:[%s510_s2 + $0x68] sm:$0xff]  ;;  %v46_v7 = vld [vmem:[%s510_s2 + $0x58] sm:$0xff] }
   0x3   :  { %v30_v5 = vld [vmem:[%s509_s1 + $0x60] sm:$0xff]  ;;  %322 = vmatpush.msk.msra.mxu3 %vm180_vm0, %v34_v0  ;;  %128 = vperm.xlu0 %325, %v50_v1   ;;  %v49_v8 = vld [vmem:[%s510_s2 + $0x70] sm:$0xff]  ;;  %v19_v9 = vld [vmem:[%s509_s1 + $0x8] sm:$0xff] }
   0x4   :  { %305 = vmatmul.msk.f32.vlgmr.msra.gmra.mxu0 %vm131_vm1, %v18_v2  ;;  %311 = vmatmul.msk.f32.vlgmr.msra.gmra.mxu2 %vm131_vm1, %v24_v4  ;;  %v25_v10 = vld [vmem:[%s509_s1 + $0x38] sm:$0xff]  ;;  %v31_v11 = vld [vmem:[%s509_s1 + $0x68] sm:$0xff] }
   0x5   :  { %317 = vmatmul.msk.f32.vlgmr.msra.gmra.mxu3 %vm131_vm1, %v30_v5  ;;  %327 = vset.pattern.permute.xlu2 %v354_v3 }
   0x6   :  { %118 = vperm.xlu1 %326, %v48_v6   ;;  %108 = vperm.xlu2 %327, %v46_v7  }
   0x7   :  { %9 = vsyncpa [#allocation3], 0  ;;  %v47_v12 = vld [vmem:[%s510_s2 + $0x60] sm:$0xff]  ;;  %v45_v13 = vld [vmem:[%s510_s2 + $0x50] sm:$0xff]  ;;  %s355_s26 = smov [#allocation2]   ;;  %s295_s30 = sshll.u32 %s512_s4, 4  ;;  %s296_s30 = int_to_ptr.hbm [resolvable:$true] %s295_s30 }
   0x8   :  { %v44_v14 = vld [vmem:[%s510_s2 + $0x48] sm:$0xff]  ;;  %v20_v15 = vld [vmem:[%s509_s1 + $0x10] sm:$0xff]  ;;  %v26_v16 = vld [vmem:[%s509_s1 + $0x40] sm:$0xff]  ;;  %s293_s27 = sshll.u32 %s355_s26, 4  ;;  %vm286_vm2 = vcmask 64512   ;;  %s294_s27 = int_to_ptr.vmem [resolvable:$true] %s293_s27 }
   0x9   :  { %v32_v17 = vld [vmem:[%s509_s1 + $0x70] sm:$0xff]  ;;  %v43_v18 = vld [vmem:[%s510_s2 + $0x40] sm:$0xff]  ;;  %v42_v19 = vld [vmem:[%s510_s2 + $0x38] sm:$0xff] }
   0xa   :  { %v41_v20 = vld [vmem:[%s510_s2 + $0x30] sm:$0xff]  ;;  %v21_v21 = vld [vmem:[%s509_s1 + $0x18] sm:$0xff]  ;;  %v27_v22 = vld [vmem:[%s509_s1 + $0x48] sm:$0xff] }
   0xb   :  { %123 = vperm.xlu0 %325, %v49_v8   ;;  %v33_v23 = vld [vmem:[%s509_s1 + $0x78] sm:$0xff]  ;;  %v40_v24 = vld [vmem:[%s510_s2 + $0x28] sm:$0xff]  ;;  %v39_v25 = vld [vmem:[%s510_s2 + $0x20] sm:$0xff] }
   0xc   :  { %306 = vmatmul.msk.f32.gmra.mxu0 %vm131_vm1, %v19_v9  ;;  %312 = vmatmul.msk.f32.gmra.mxu2 %vm131_vm1, %v25_v10  ;;  %v38_v26 = vld [vmem:[%s510_s2 + $0x18] sm:$0xff]  ;;  %v22_v27 = vld [vmem:[%s509_s1 + $0x20] sm:$0xff]  ;;  %v28_v28 = vld [vmem:[%s509_s1 + $0x50] sm:$0xff] }
   0xd   :  { %318 = vmatmul.msk.f32.gmra.mxu3 %vm131_vm1, %v31_v11  ;;  %v37_v29 = vld [vmem:[%s510_s2 + $0x10] sm:$0xff]  ;;  %v36_v30 = vld [vmem:[%s510_s2 + $0x8] sm:$0xff]  ;;  %v35_v31 = vld [vmem:[%s510_s2] sm:$0xff] }
   0xe   :  { %113 = vperm.xlu1 %326, %v47_v12   ;;  %103 = vperm.xlu2 %327, %v45_v13   ;;  %v23_v32 = vld [vmem:[%s509_s1 + $0x28] sm:$0xff]  ;;  %v29_v33 = vld [vmem:[%s509_s1 + $0x58] sm:$0xff] }
  0x13   :  { %98 = vperm.xlu0 %325, %v44_v14  }
  0x14   :  { %307 = vmatmul.msk.f32.gmra.mxu0 %vm131_vm1, %v20_v15  ;;  %313 = vmatmul.msk.f32.gmra.mxu2 %vm131_vm1, %v26_v16 }
  0x15   :  { %319 = vmatmul.msk.f32.gmra.mxu3 %vm131_vm1, %v32_v17 }
  0x16   :  { %93 = vperm.xlu1 %326, %v43_v18   ;;  %88 = vperm.xlu2 %327, %v42_v19  }
  0x1b   :  { %83 = vperm.xlu0 %325, %v41_v20  }
  0x1c   :  { %308 = vmatmul.msk.f32.gmra.mxu0 %vm131_vm1, %v21_v21  ;;  %314 = vmatmul.msk.f32.gmra.mxu2 %vm131_vm1, %v27_v22 }
  0x1d   :  { %320 = vmatmul.msk.f32.gmra.mxu3 %vm131_vm1, %v33_v23 }
  0x1e   :  { %78 = vperm.xlu1 %326, %v40_v24   ;;  %73 = vperm.xlu2 %327, %v39_v25  }
  0x23   :  { %68 = vperm.xlu0 %325, %v38_v26  }
  0x24   :  { %309 = vmatmul.msk.f32.gmra.mxu0 %vm131_vm1, %v22_v27  ;;  %315 = vmatmul.msk.f32.gmra.mxu2 %vm131_vm1, %v28_v28 }
  0x26   :  { %63 = vperm.xlu1 %326, %v37_v29   ;;  %58 = vperm.xlu2 %327, %v36_v30  }
  0x2b   :  { %53 = vperm.xlu0 %325, %v35_v31  }
  0x2c   :  { %310 = vmatmul.msk.f32.gmra.mxu0 %vm131_vm1, %v23_v32  ;;  %316 = vmatmul.msk.f32.gmra.mxu2 %vm131_vm1, %v29_v33 }
  0x60   :  { %v109_v42 = vpop.permute.xlu2 %108 }
  0x68   :  { %v104_v52 = vpop.permute.xlu2 %103 }
  0x70   :  { %v89_v63 = vpop.permute.xlu2 %88 }
  0x75   :  { %v129_v37 = vpop.permute.xlu0 %128 }
  0x78   :  { %v119_v41 = vpop.permute.xlu1 %118  ;;  %v74_v10 = vpop.permute.xlu2 %73 }
  0x7d   :  { %v124_v45 = vpop.permute.xlu0 %123 }
  0x80   :  { %v114_v47 = vpop.permute.xlu1 %113  ;;  %v59_v24 = vpop.permute.xlu2 %58 }
  0x81   :  { %v496_v34 = vpop.f32.mrf.mxu0 }
  0x85   :  { %v99_v55 = vpop.permute.xlu0 %98 }
  0x87   :  { %v219_v35 = vpop.f32.mrf.mxu2 }
  0x88   :  { %v237_v36 = vpop.f32.mrf.mxu3  ;;  %v94_v62 = vpop.permute.xlu1 %93 }
  0x89   :  { %v498_v38 = vpop.f32.mrf.mxu0  ;;  %v238_v57 = vadd.f32 %v237_v36, %v114_v47 }
  0x8a   :  { %v205_v29 = vadd.f32 %v498_v38, %v59_v24 }
  0x8b   :  { %v261_v61 = vmax.f32 %v238_v57, 0.0 }
  0x8c   :  { %v250_v32 = vmax.f32 %v205_v29, 0.0 }
  0x8d   :  { %v84_v0 = vpop.permute.xlu0 %83 }
  0x8e   :  { %v220_v15 = vadd.f32 %v219_v35, %v84_v0  ;;  %v265_v35 = vld [vmem:[%s511_s3] sm:$0xff] }
  0x8f   :  { %v222_v39 = vpop.f32.mrf.mxu2 }
  0x90   :  { %v240_v40 = vpop.f32.mrf.mxu3  ;;  %v79_v7 = vpop.permute.xlu1 %78  ;;  %v223_v11 = vadd.f32 %v222_v39, %v89_v63  ;;  %v255_v19 = vmax.f32 %v220_v15, 0.0 }
  0x91   :  { %v207_v46 = vpop.f32.mrf.mxu0  ;;  %v241_v53 = vadd.f32 %v240_v40, %v119_v41 }
  0x92   :  { %v256_v17 = vmax.f32 %v223_v11, 0.0 }
  0x93   :  { %v262_v59 = vmax.f32 %v241_v53, 0.0 }
  0x95   :  { %v69_v13 = vpop.permute.xlu0 %68 }
  0x97   :  { %v225_v43 = vpop.f32.mrf.mxu2 }
  0x98   :  { %v243_v44 = vpop.f32.mrf.mxu3  ;;  %v226_v8 = vadd.f32 %v225_v43, %v94_v62  ;;  %v64_v21 = vpop.permute.xlu1 %63 }
  0x99   :  { %v244_v50 = vadd.f32 %v243_v44, %v124_v45  ;;  %v210_v56 = vpop.f32.mrf.mxu0  ;;  %v208_v25 = vadd.f32 %v207_v46, %v64_v21 }
  0x9a   :  { %v257_v16 = vmax.f32 %v226_v8, 0.0  ;;  %v211_v22 = vadd.f32 %v210_v56, %v69_v13 }
  0x9b   :  { %v263_v58 = vmax.f32 %v244_v50, 0.0  ;;  %v251_v31 = vmax.f32 %v208_v25, 0.0 }
  0x9c   :  { %v252_v28 = vmax.f32 %v211_v22, 0.0 }
  0x9d   :  { %v54_v27 = vpop.permute.xlu0 %53 }
  0x9e   :  { %v202_v30 = vadd.f32 %v496_v34, %v54_v27 }
  0x9f   :  { %v228_v48 = vpop.f32.mrf.mxu2 }
  0xa0   :  { %v246_v49 = vpop.f32.mrf.mxu3  ;;  %v229_v5 = vadd.f32 %v228_v48, %v99_v55  ;;  %v249_v33 = vmax.f32 %v202_v30, 0.0 }
  0xa1   :  { %v247_v51 = vadd.f32 %v246_v49, %v129_v37  ;;  %v213_v1 = vpop.f32.mrf.mxu0 }
  0xa2   :  { %v258_v12 = vmax.f32 %v229_v5, 0.0  ;;  %v214_v20 = vadd.f32 %v213_v1, %v74_v10 }
  0xa3   :  { %v264_v54 = vmax.f32 %v247_v51, 0.0 }
  0xa4   :  { %v253_v26 = vmax.f32 %v214_v20, 0.0 }
  0xa5   :  { %266 = vmatpush.msra.mxu1 %v264_v54 }
  0xa7   :  { %267 = vmatpush.msra.mxu1 %v263_v58  ;;  %v231_v60 = vpop.f32.mrf.mxu2 }
  0xa8   :  { %v232_v3 = vadd.f32 %v231_v60, %v104_v52 }
  0xa9   :  { %268 = vmatpush.msra.mxu1 %v262_v59  ;;  %v216_v14 = vpop.f32.mrf.mxu0 }
  0xaa   :  { %v259_v9 = vmax.f32 %v232_v3, 0.0  ;;  %v217_v18 = vadd.f32 %v216_v14, %v79_v7 }
  0xab   :  { %269 = vmatpush.msra.mxu1 %v261_v61 }
  0xac   :  { %v254_v23 = vmax.f32 %v217_v18, 0.0 }
  0xaf   :  { %v234_v2 = vpop.f32.mrf.mxu2 }
  0xb0   :  { %v235_v4 = vadd.f32 %v234_v2, %v109_v42 }
  0xb2   :  { %v260_v6 = vmax.f32 %v235_v4, 0.0 }
  0xb4   :  { %270 = vmatpush.msra.mxu1 %v260_v6 }
  0xb6   :  { %271 = vmatpush.msra.mxu1 %v259_v9 }
  0xb8   :  { %272 = vmatpush.msra.mxu1 %v258_v12 }
  0xba   :  { %273 = vmatpush.msra.mxu1 %v257_v16 }
  0xbc   :  { %274 = vmatpush.msra.mxu1 %v256_v17 }
  0xbe   :  { %275 = vmatpush.msra.mxu1 %v255_v19 }
  0xc0   :  { %276 = vmatpush.msra.mxu1 %v254_v23 }
  0xc2   :  { %277 = vmatpush.msra.mxu1 %v253_v26 }
  0xc4   :  { %278 = vmatpush.msra.mxu1 %v252_v28 }
  0xc6   :  { %279 = vmatpush.msra.mxu1 %v251_v31 }
  0xc8   :  { %280 = vmatpush.msra.mxu1 %v250_v32 }
  0xca   :  { %281 = vmatpush.msra.mxu1 %v249_v33 }
  0xcb   :  { %282 = vmatmul.f32.vlgmr.msra.gmra.mxu1 %v265_v35 }
 0x148   :  { %v283_v34 = vpop.f32.mrf.mxu1 }
 0x149   :  { %287 = vst.msk [vmem:[#allocation2] sm:$0xff] %vm286_vm2, %v283_v34 }
 0x14a   :  { %298 = dma.vmem_to_hbm [thread:$0]  %s294_s27, 128, %s296_s30, [#allocation3]  }
 0x14b   :  { %352 = dma.done.wait [#allocation3], 128  }
 0x14c   :  { %353 = vsyncadd [#allocation3], 4294967168 }
 0x14d   :  { %303 = vsyncpa [#allocation3], 1 }

</bundles_post_ra>
